<compile_context>
chip_gen: v7x
topology: tpu7x:2x2x1
jax: 0.10.0
libtpu: 0.0.40
codegen_flags: <defaults>
</compile_context>

<pallas_src>
import jax
import jax.numpy as jnp
from jax.experimental import pallas as pl
from jax.experimental.pallas import tpu as pltpu


def temporal_encoder_kernel(x_ref, w_ref, b_ref, o_ref, g_ref):
    """One block of b_blk batch elements per grid step.

    x_ref: (b_blk, C_in, T)    raw NCT input block (no wrapper transpose/pad)
    w_ref: (C_out, 3*Cpad)     im2col weights, w_ref[o, k*Cpad + i] = W[o, i, k]
    b_ref: (C_out, 1)          bias column
    o_ref: (1, C_out, b_blk)   per-block output (batch along lanes)
    g_ref: (3*Cpad, b_blk*T)   VMEM scratch holding the im2col RHS
    """
    b_blk, c_in, T = x_ref.shape
    cpad = w_ref.shape[1] // 3
    n = b_blk * T

    # Build the im2col RHS in VMEM: rows = 3 taps x (channels, sublane-padded),
    # columns = (batch element, time) packed along lanes.  Zeroing supplies
    # both the conv's time padding and the unused padded channel rows.
    g_ref[...] = jnp.zeros_like(g_ref)
    for e in range(b_blk):                       # static unroll over the block
        xe = x_ref[e]                            # (C_in, T)
        # tap k=1 (center): xpad[:, t+1] == x[:, t]
        g_ref[cpad:cpad + c_in, e * T:e * T + T] = xe
        # tap k=0 (left):   xpad[:, t+0] == x[:, t-1]   (zero at t=0)
        g_ref[0:c_in, e * T + 1:e * T + T] = xe[:, 0:T - 1]
        # tap k=2 (right):  xpad[:, t+2] == x[:, t+1]   (zero at t=T-1)
        g_ref[2 * cpad:2 * cpad + c_in, e * T:e * T + T - 1] = xe[:, 1:T]

    # Single fused MXU matmul for all 3 taps and all batch elements in block.
    r = jnp.dot(w_ref[...], g_ref[...], preferred_element_type=jnp.float32)
    r = jnp.maximum(r + b_ref[...], 0.0)         # bias + ReLU -> (C_out, b_blk*T)

    # Per-element mean over time as one small matmul against a block-averaging
    # matrix (column e averages lanes [e*T, (e+1)*T)).
    row = jax.lax.broadcasted_iota(jnp.int32, (n, b_blk), 0)
    col = jax.lax.broadcasted_iota(jnp.int32, (n, b_blk), 1)
    in_block = (row >= col * T) & (row < (col + 1) * T)
    avg = jnp.where(in_block, jnp.float32(1.0 / T), jnp.float32(0.0))
    o_ref[0] = jnp.dot(r, avg, preferred_element_type=jnp.float32)


def temporal_encoder(x_nct, weight, bias, *, b_blk=None):
    """x_nct: (B, C_in, T) float32 (PyTorch NCT layout).
    weight: (C_out, C_in, 3), bias: (C_out,).  Returns (B, C_out)."""
    B, c_in, T = x_nct.shape
    c_out = weight.shape[0]

    # Batch block per grid step.  With T=16, b_blk=8 makes the matmul RHS
    # exactly 128 lanes wide; B >= 16 then yields >= 2 parallel grid steps so
    # both v7x TensorCores get work (no cost on v5e/v6e).
    if b_blk is None:
        b_blk = min(B, 8)
    grid_b = pl.cdiv(B, b_blk)
    B_pad = grid_b * b_blk
    if B_pad != B:
        x_nct = jnp.pad(x_nct, ((0, B_pad - B), (0, 0), (0, 0)))

    # Tiny parameter-side reshapes only -- no HBM pass over the activation.
    cpad = ((c_in + 7) // 8) * 8                                  # sublane-align tap groups
    w_p = jnp.pad(weight, ((0, 0), (0, cpad - c_in), (0, 0)))     # (C_out, Cpad, 3)
    w2 = jnp.transpose(w_p, (0, 2, 1)).reshape(c_out, 3 * cpad)   # [o, k*Cpad+i] = W[o,i,k]
    b_col = bias.reshape(c_out, 1).astype(jnp.float32)

    out3 = pl.pallas_call(
        temporal_encoder_kernel,
        out_shape=jax.ShapeDtypeStruct((grid_b, c_out, b_blk), jnp.float32),
        grid_spec=pltpu.PrefetchScalarGridSpec(
            num_scalar_prefetch=0,
            grid=(grid_b,),
            in_specs=[
                pl.BlockSpec((b_blk, c_in, T), lambda g: (g, 0, 0)),
                pl.BlockSpec((c_out, 3 * cpad), lambda g: (0, 0)),
                pl.BlockSpec((c_out, 1), lambda g: (0, 0)),
            ],
            out_specs=pl.BlockSpec((1, c_out, b_blk), lambda g: (g, 0, 0)),
            scratch_shapes=[pltpu.VMEM((3 * cpad, b_blk * T), jnp.float32)],
        ),
        compiler_params=pltpu.CompilerParams(
            dimension_semantics=("parallel",),
        ),
    )(x_nct, w2, b_col)

    # Tiny output re-layout: (grid_b, C_out, b_blk) -> (B, C_out).
    out = jnp.transpose(out3, (0, 2, 1)).reshape(B_pad, c_out)
    return out[:B]


def temporal_encoder_ref(x_nct, weight, bias):
    """Pure-JAX reference matching PyTorch Conv1d(k=3, p=1) -> ReLU -> mean(t)."""
    B, c_in, T = x_nct.shape
    c_out = weight.shape[0]
    x_pad = jnp.pad(x_nct, ((0, 0), (0, 0), (1, 1)))
    out = jnp.zeros((B, c_out, T), jnp.float32)
    for k in range(3):
        out = out + jnp.einsum('oi,bit->bot', weight[:, :, k], x_pad[:, :, k:k + T])
    out = out + bias[None, :, None]
    out = jax.nn.relu(out)
    return out.mean(axis=2)


if __name__ == "__main__":
    key = jax.random.PRNGKey(0)
    k_x, k_w, k_b = jax.random.split(key, 3)

    B, C_IN, C_OUT, T = 2, 4, 32, 16

    x = jax.random.normal(k_x, (B, C_IN, T), dtype=jnp.float32)
    # Deterministic synthetic parameters (shapes per nn.Conv1d(in, out, 3, padding=1)).
    weight = 0.1 * jax.random.normal(k_w, (C_OUT, C_IN, 3), dtype=jnp.float32)
    bias = 0.05 * jax.random.normal(k_b, (C_OUT,), dtype=jnp.float32)

    out = temporal_encoder(x, weight, bias)
    out = jax.block_until_ready(out)

    ref = temporal_encoder_ref(x, weight, bias)
    assert out.shape == (B, C_OUT), out.shape
    assert jnp.allclose(out, ref, atol=1e-5, rtol=1e-5), "mismatch vs reference"

    print("KERNEL_OK")
</pallas_src>

<mosaic_0001>
module attributes {stable_mosaic.version = 11 : i64} {
  func.func @temporal_encoder_kernel(%arg0: i32, %arg1: memref<2x4x16xf32, #tpu.memory_space<vmem>>, %arg2: memref<32x24xf32, #tpu.memory_space<vmem>>, %arg3: memref<32x1xf32, #tpu.memory_space<vmem>>, %arg4: memref<1x32x2xf32, #tpu.memory_space<vmem>>, %arg5: memref<24x32xf32, #tpu.memory_space<vmem>>) attributes {dimension_semantics = [#tpu.dimension_semantics<parallel>], iteration_bounds = array<i64: 1>, scalar_prefetch = 0 : i64, scratch_operands = 1 : i64, tpu.core_type = #tpu.core_type<tc>, window_params = [{transform_indices = @transform_0, window_bounds = array<i64: 2, 4, 16>}, {pipeline_mode = #tpu.pipeline_mode<synchronous>, transform_indices = @transform_1, window_bounds = array<i64: 32, 24>}, {pipeline_mode = #tpu.pipeline_mode<synchronous>, transform_indices = @transform_2, window_bounds = array<i64: 32, 1>}, {transform_indices = @transform_3, window_bounds = array<i64: 1, 32, 2>}]} {
    %cst = arith.constant 0.000000e+00 : f32
    %0 = vector.broadcast %cst : f32 to vector<24x32xf32>
    %c0 = arith.constant 0 : index
    %c0_0 = arith.constant 0 : index
    %1 = vector.load %arg5[%c0, %c0_0] : memref<24x32xf32, #tpu.memory_space<vmem>>, vector<24x32xf32>
    tpu.vector_store %arg5[%c0, %c0_0], %0 {strides = array<i32>} : memref<24x32xf32, #tpu.memory_space<vmem>>, vector<24x32xf32>,
    %c0_1 = arith.constant 0 : index
    %c0_2 = arith.constant 0 : index
    %c0_3 = arith.constant 0 : index
    %2 = vector.load %arg1[%c0_1, %c0_2, %c0_3] : memref<2x4x16xf32, #tpu.memory_space<vmem>>, vector<1x4x16xf32>
    %3 = vector.shape_cast %2 : vector<1x4x16xf32> to vector<4x16xf32>
    %c8 = arith.constant 8 : index
    %c0_4 = arith.constant 0 : index
    %4 = vector.load %arg5[%c8, %c0_4] : memref<24x32xf32, #tpu.memory_space<vmem>>, vector<4x16xf32>
    tpu.vector_store %arg5[%c8, %c0_4], %3 {strides = array<i32>} : memref<24x32xf32, #tpu.memory_space<vmem>>, vector<4x16xf32>,
    %5 = vector.extract_strided_slice %3 {offsets = [0, 0], sizes = [4, 15], strides = [1, 1]} : vector<4x16xf32> to vector<4x15xf32>
    %c0_5 = arith.constant 0 : index
    %c1 = arith.constant 1 : index
    %6 = vector.load %arg5[%c0_5, %c1] : memref<24x32xf32, #tpu.memory_space<vmem>>, vector<4x15xf32>
    tpu.vector_store %arg5[%c0_5, %c1], %5 {strides = array<i32>} : memref<24x32xf32, #tpu.memory_space<vmem>>, vector<4x15xf32>,
    %7 = vector.extract_strided_slice %3 {offsets = [0, 1], sizes = [4, 15], strides = [1, 1]} : vector<4x16xf32> to vector<4x15xf32>
    %c16 = arith.constant 16 : index
    %c0_6 = arith.constant 0 : index
    %8 = vector.load %arg5[%c16, %c0_6] : memref<24x32xf32, #tpu.memory_space<vmem>>, vector<4x15xf32>
    tpu.vector_store %arg5[%c16, %c0_6], %7 {strides = array<i32>} : memref<24x32xf32, #tpu.memory_space<vmem>>, vector<4x15xf32>,
    %c1_7 = arith.constant 1 : index
    %c0_8 = arith.constant 0 : index
    %c0_9 = arith.constant 0 : index
    %9 = vector.load %arg1[%c1_7, %c0_8, %c0_9] : memref<2x4x16xf32, #tpu.memory_space<vmem>>, vector<1x4x16xf32>
    %10 = vector.shape_cast %9 : vector<1x4x16xf32> to vector<4x16xf32>
    %c8_10 = arith.constant 8 : index
    %c16_11 = arith.constant 16 : index
    %11 = vector.load %arg5[%c8_10, %c16_11] : memref<24x32xf32, #tpu.memory_space<vmem>>, vector<4x16xf32>
    tpu.vector_store %arg5[%c8_10, %c16_11], %10 {strides = array<i32>} : memref<24x32xf32, #tpu.memory_space<vmem>>, vector<4x16xf32>,
    %12 = vector.extract_strided_slice %10 {offsets = [0, 0], sizes = [4, 15], strides = [1, 1]} : vector<4x16xf32> to vector<4x15xf32>
    %c0_12 = arith.constant 0 : index
    %c17 = arith.constant 17 : index
    %13 = vector.load %arg5[%c0_12, %c17] : memref<24x32xf32, #tpu.memory_space<vmem>>, vector<4x15xf32>
    tpu.vector_store %arg5[%c0_12, %c17], %12 {strides = array<i32>} : memref<24x32xf32, #tpu.memory_space<vmem>>, vector<4x15xf32>,
    %14 = vector.extract_strided_slice %10 {offsets = [0, 1], sizes = [4, 15], strides = [1, 1]} : vector<4x16xf32> to vector<4x15xf32>
    %c16_13 = arith.constant 16 : index
    %c16_14 = arith.constant 16 : index
    %15 = vector.load %arg5[%c16_13, %c16_14] : memref<24x32xf32, #tpu.memory_space<vmem>>, vector<4x15xf32>
    tpu.vector_store %arg5[%c16_13, %c16_14], %14 {strides = array<i32>} : memref<24x32xf32, #tpu.memory_space<vmem>>, vector<4x15xf32>,
    %c0_15 = arith.constant 0 : index
    %c0_16 = arith.constant 0 : index
    %16 = vector.load %arg2[%c0_15, %c0_16] : memref<32x24xf32, #tpu.memory_space<vmem>>, vector<32x24xf32>
    %c0_17 = arith.constant 0 : index
    %c0_18 = arith.constant 0 : index
    %17 = vector.load %arg5[%c0_17, %c0_18] : memref<24x32xf32, #tpu.memory_space<vmem>>, vector<24x32xf32>
    %cst_19 = arith.constant dense<0.000000e+00> : vector<32x32xf32>
    %18 = tpu.matmul %16, %17, %cst_19 {dimension_numbers = #tpu.dot_dimension_numbers<[1], [0], [0], [1], [0, 0, 1, 1], [], []>} : vector<32x24xf32>, vector<24x32xf32>, vector<32x32xf32> -> vector<32x32xf32>
    %c0_20 = arith.constant 0 : index
    %c0_21 = arith.constant 0 : index
    %19 = vector.load %arg3[%c0_20, %c0_21] : memref<32x1xf32, #tpu.memory_space<vmem>>, vector<32x1xf32>
    %20 = vector.broadcast %19 : vector<32x1xf32> to vector<32x32xf32>
    %21 = arith.addf %18, %20 : vector<32x32xf32>
    %cst_22 = arith.constant 0.000000e+00 : f32
    %22 = vector.broadcast %cst_22 : f32 to vector<32x32xf32>
    %23 = arith.maximumf %21, %22 : vector<32x32xf32>
    %24 = tpu.iota {dimensions = array<i32: 0>} : vector<32x2xi32>
    %25 = tpu.iota {dimensions = array<i32: 1>} : vector<32x2xi32>
    %c16_i32 = arith.constant 16 : i32
    %26 = vector.broadcast %c16_i32 : i32 to vector<32x2xi32>
    %27 = arith.muli %25, %26 : vector<32x2xi32>
    %28 = arith.cmpi sge, %24, %27 : vector<32x2xi32>
    %c1_i32 = arith.constant 1 : i32
    %29 = vector.broadcast %c1_i32 : i32 to vector<32x2xi32>
    %30 = arith.addi %25, %29 : vector<32x2xi32>
    %c16_i32_23 = arith.constant 16 : i32
    %31 = vector.broadcast %c16_i32_23 : i32 to vector<32x2xi32>
    %32 = arith.muli %30, %31 : vector<32x2xi32>
    %33 = arith.cmpi slt, %24, %32 : vector<32x2xi32>
    %34 = arith.andi %28, %33 : vector<32x2xi1>
    %cst_24 = arith.constant 6.250000e-02 : f32
    %cst_25 = arith.constant 0.000000e+00 : f32
    %35 = vector.broadcast %cst_24 : f32 to vector<32x2xf32>
    %36 = vector.broadcast %cst_25 : f32 to vector<32x2xf32>
    %37 = arith.select %34, %35, %36 : vector<32x2xi1>, vector<32x2xf32>
    %cst_26 = arith.constant dense<0.000000e+00> : vector<32x2xf32>
    %38 = tpu.matmul %23, %37, %cst_26 {dimension_numbers = #tpu.dot_dimension_numbers<[1], [0], [0], [1], [0, 0, 1, 1], [], []>} : vector<32x32xf32>, vector<32x2xf32>, vector<32x2xf32> -> vector<32x2xf32>
    %c0_27 = arith.constant 0 : index
    %c0_28 = arith.constant 0 : index
    %c0_29 = arith.constant 0 : index
    %39 = vector.load %arg4[%c0_27, %c0_28, %c0_29] : memref<1x32x2xf32, #tpu.memory_space<vmem>>, vector<1x32x2xf32>
    %40 = vector.shape_cast %39 : vector<1x32x2xf32> to vector<32x2xf32>
    %41 = vector.shape_cast %38 : vector<32x2xf32> to vector<1x32x2xf32>
    tpu.vector_store %arg4[%c0_27, %c0_28, %c0_29], %41 {strides = array<i32>} : memref<1x32x2xf32, #tpu.memory_space<vmem>>, vector<1x32x2xf32>,
    return
  }
  func.func @transform_0(%arg0: i32) -> (i32, i32, i32) {
    %c0_i32 = arith.constant 0 : i32
    %c0_i32_0 = arith.constant 0 : i32
    %c0_i32_1 = arith.constant 0 : i32
    return %arg0, %c0_i32, %c0_i32_0 : i32, i32, i32
  }
  func.func @transform_1(%arg0: i32) -> (i32, i32) {
    %c0_i32 = arith.constant 0 : i32
    %c0_i32_0 = arith.constant 0 : i32
    %c0_i32_1 = arith.constant 0 : i32
    return %c0_i32, %c0_i32_0 : i32, i32
  }
  func.func @transform_2(%arg0: i32) -> (i32, i32) {
    %c0_i32 = arith.constant 0 : i32
    %c0_i32_0 = arith.constant 0 : i32
    %c0_i32_1 = arith.constant 0 : i32
    return %c0_i32, %c0_i32_0 : i32, i32
  }
  func.func @transform_3(%arg0: i32) -> (i32, i32, i32) {
    %c0_i32 = arith.constant 0 : i32
    %c0_i32_0 = arith.constant 0 : i32
    %c0_i32_1 = arith.constant 0 : i32
    return %arg0, %c0_i32, %c0_i32_0 : i32, i32, i32
  }
}

</mosaic_0001>

<bundles_post_ra>
// kernel: tpu_custom_call.1
= control target key start
LH: loop header
LB: loop body
LE: loop exit
PB: predicated region body
PF: predicated region fallthrough
CT: control target
= control target key end

     0   :  { %vm14_vm0 = vcmask 261120   ;;  %v391_v2 = vmov 0.0   ;;  %s392_s16 = smov 1   ;;  %s393_s17 = smov 17   ;;  %vm19_vm1 = vcmask 125952   ;;  %vm81_vm2 = vcmask 195584   ;;  %s472_s0 = inlined_call_operand.vmem [shape: f32[2,4,16], index: 0, kind: input, shape index: {}]   ;;  %s473_s1 = inlined_call_operand.vmem [shape: f32[32,24], index: 1, kind: input, shape index: {}]   ;;  %s474_s2 = inlined_call_operand.vmem [shape: f32[32,1], index: 2, kind: input, shape index: {}]   ;;  %s475_s3 = inlined_call_operand.vmem [shape: f32[1,32,2], index: 3, kind: output, shape index: {}]  }
   0x1   :  { %v18_v0 = vld [vmem:[%s472_s0] sm:$0xf]  ;;  %v315_v1 = vld [vmem:[%s472_s0 + $0x4] sm:$0xf]  ;;  %15 = vst.msk [vmem:[#allocation2] sm:$0xff] %vm14_vm0, %v391_v2  ;;  %16 = vst.msk [vmem:[#allocation2 + $0x8] sm:$0xff] %vm14_vm0, %v391_v2  ;;  %v183_v9 = vlaneseq }
   0x2   :  { %17 = vst.msk [vmem:[#allocation2 + $0x10] sm:$0xff] %vm14_vm0, %v391_v2  ;;  %22 = vrot.lane.b32.xlu0 %v18_v0, %s392_s16  ;;  %40 = vrot.lane.b32.xlu1 %v315_v1, %s393_s17  ;;  %s394_s18 = smov 16   ;;  %s395_s19 = smov 127   ;;  %v50_v3 = vld [vmem:[%s473_s1] sm:$0xff]  ;;  %v397_v4 = vmov 0   ;;  %v58_v6 = vld [vmem:[%s474_s2 + $0x8] sm:$0xff] }
   0x3   :  { %20 = vst.msk [vmem:[#allocation2 + $0x8] sm:$0xf] %vm19_vm1, %v18_v0  ;;  %349 = vmatprep.mubr.msk.f32.mxu0 %vm81_vm2, %v50_v3  ;;  %s396_s0 = smov 15   ;;  %389 = vset.pattern.permute.xlu1 %v397_v4  ;;  %v57_v5 = vld [vmem:[%s474_s2] sm:$0xff]  ;;  %v59_v7 = vld [vmem:[%s474_s2 + $0x10] sm:$0xff]  ;;  %v60_v8 = vld [vmem:[%s474_s2 + $0x18] sm:$0xff] }
   0x4   :  { %390 = vset.pattern.permute.xlu0 %v397_v4  ;;  %v184_v10 = vshrl.u32 %v183_v9, 7  ;;  %v189_v11 = vand.u32 127, %v183_v9  ;;  %v398_v16 = vmov 0.0625|0.0625   ;;  %vm25_vm10 = vcmask 125960   ;;  %v51_v26 = vld [vmem:[%s473_s1 + $0x8] sm:$0xff] }
   0x5   :  { %vm43_vm11 = vcmask 257160   ;;  %vm38_vm12 = vcmask 257152   ;;  %vm30_vm13 = vcmask 117760   ;;  %vm48_vm14 = vcmask 248960   ;;  %v52_v27 = vld [vmem:[%s473_s1 + $0x10] sm:$0xff]  ;;  %v53_v28 = vld [vmem:[%s473_s1 + $0x18] sm:$0xff] }
   0x6   :  { %35 = vrot.lane.b32.xlu0 %v315_v1, %s394_s18  ;;  %27 = vrot.lane.b32.xlu1 %v18_v0, %s395_s19  ;;  %v185_v12 = vadd.s32 8, %v184_v10  ;;  %v190_v13 = vmul.u32 16, %v189_v11  ;;  %v195_v14 = vadd.s32 1, %v189_v11  ;;  %v186_v29 = vadd.s32 16, %v184_v10 }
   0x7   :  { %v187_v30 = vadd.s32 24, %v184_v10 }
   0x8   :  { %vm191_vm3 = vcmp.ge.s32.totalorder %v184_v10, %v190_v13  ;;  %v196_v15 = vmul.u32 16, %v195_v14  ;;  %vm192_vm4 = vcmp.ge.s32.totalorder %v185_v12, %v190_v13  ;;  %vm193_vm15 = vcmp.ge.s32.totalorder %v186_v29, %v190_v13 }
   0x9   :  { %vm194_vm1 = vcmp.ge.s32.totalorder %v187_v30, %v190_v13 }
   0xa   :  { %45 = vrot.lane.b32.xlu0 %v315_v1, %s396_s0  ;;  %63 = vperm.xlu1 %389, %v57_v5   ;;  %vm197_vm5 = vcmp.lt.s32.totalorder %v184_v10, %v196_v15  ;;  %vm198_vm6 = vcmp.lt.s32.totalorder %v185_v12, %v196_v15 }
   0xb   :  { %vm201_vm7 = vmand %vm191_vm3, %vm197_vm5  ;;  %vm199_vm3 = vcmp.lt.s32.totalorder %v186_v29, %v196_v15 }
   0xc   :  { %vm202_vm8 = vmand %vm192_vm4, %vm198_vm6  ;;  %vm200_vm4 = vcmp.lt.s32.totalorder %v187_v30, %v196_v15 }
   0xd   :  { %vm373_vm9 = vmpackc.low %vm202_vm8, %vm201_vm7 }
   0xe   :  { %68 = vperm.xlu0 %390, %v58_v6   ;;  %73 = vperm.xlu1 %389, %v59_v7   ;;  %vm203_vm5 = vmand %vm193_vm15, %vm199_vm3 }
   0xf   :  { %374 = vmatprep.subr.msk.bf16.mxu1 %vm373_vm9, %v398_v16  ;;  %vm204_vm6 = vmand %vm194_vm1, %vm200_vm4 }
  0x10   :  { %376 = vmatpush3.bf16.msk.msra.mxu1 %vm373_vm9, %v398_v16  ;;  %vm377_vm7 = vmpackc.low %vm204_vm6, %vm203_vm5 }
  0x11   :  { %378 = vmatprep.subr.msk.bf16.mxu1 %vm377_vm7, %v398_v16 }
  0x12   :  { %78 = vperm.xlu1 %389, %v60_v8  }
  0x14   :  { %380 = vmatpush3.bf16.msk.msra.mxu1 %vm377_vm7, %v398_v16 }
  0x74   :  { %v23_v17 = vpop.permute.xlu0 %22  ;;  %v41_v18 = vpop.permute.xlu1 %40 }
  0x75   :  { %26 = vst.msk [vmem:[#allocation2] sm:$0xf] %vm25_vm10, %v23_v17 }
  0x76   :  { %44 = vst.msk [vmem:[#allocation2] sm:$0xf] %vm43_vm11, %v41_v18 }
  0x78   :  { %v36_v19 = vpop.permute.xlu0 %35  ;;  %v28_v20 = vpop.permute.xlu1 %27 }
  0x79   :  { %39 = vst.msk [vmem:[#allocation2 + $0x8] sm:$0xf] %vm38_vm12, %v36_v19 }
  0x7a   :  { %31 = vst.msk [vmem:[#allocation2 + $0x10] sm:$0xf] %vm30_vm13, %v28_v20 }
  0x7c   :  { %v46_v21 = vpop.permute.xlu0 %45 }
  0x7d   :  { %49 = vst.msk [vmem:[#allocation2 + $0x10] sm:$0xf] %vm48_vm14, %v46_v21  ;;  %v54_v22 = vld [vmem:[#allocation2] sm:$0xff] }
  0x80   :  { %v55_v23 = vld [vmem:[#allocation2 + $0x8] sm:$0xff] }
  0x81   :  { %v369_v24 = vpack.c.bf16 %v55_v23, %v54_v22 }
  0x83   :  { %370 = vmatprep.subr.bf16.mxu0 %v369_v24 }
  0x84   :  { %372 = vmatpush3.bf16.msra.mxu0 %v369_v24  ;;  %v56_v25 = vld [vmem:[#allocation2 + $0x10] sm:$0xff] }
  0x85   :  { %347 = vmatprep.subr.mxu0 %v56_v25 }
  0x88   :  { %348 = vmatpush3.msra.mxu0 %v56_v25 }
  0x89   :  { %350 = vmatmul.mubr.msk.f32.vlgmr.msra.gmra.mrb[0].mxu0 %vm81_vm2, %v51_v26  ;;  %v64_v31 = vpop.permute.xlu1 %63 }
  0x8a   :  { %352 = vmatprep.mubr.msk.f32.mxu0 %vm81_vm2, %v52_v27 }
  0x8d   :  { %353 = vmatmul.mubr.msk.f32.gmra.mrb[2].mxu0 %vm81_vm2, %v53_v28  ;;  %v74_v32 = vpop.permute.xlu1 %73  ;;  %v69_v33 = vpop.permute.xlu0 %68  ;;  %vm306_vm2 = vcmask 15360  }
  0x91   :  { %v79_v38 = vpop.permute.xlu1 %78 }
 0x15c   :  { %v351_v34 = vpop.f32.mrb[0].mxu0 }
 0x15d   :  { %v166_v35 = vadd.f32 %v351_v34, %v69_v33  ;;  %v160_v36 = vpop.f32.mrb[1].mxu0 }
 0x15e   :  { %v161_v37 = vadd.f32 %v160_v36, %v64_v31 }
 0x15f   :  { %v180_v41 = vmax.f32 %v166_v35, 0.0 }
 0x160   :  { %v179_v39 = vmax.f32 %v161_v37, 0.0  ;;  %v354_v40 = vpop.f32.mrb[2].mxu0 }
 0x161   :  { %v176_v42 = vadd.f32 %v354_v40, %v79_v38  ;;  %v170_v43 = vpop.f32.mrb[3].mxu0 }
 0x162   :  { %v171_v44 = vadd.f32 %v170_v43, %v74_v32  ;;  %363 = vmatprep.mubr.msk.f32.mxu1 %vm14_vm0, %v179_v39 }
 0x163   :  { %364 = vmatmul.mubr.msk.f32.vlgmr.msra.gmra.mrb[0].mxu1 %vm14_vm0, %v180_v41  ;;  %v182_v46 = vmax.f32 %v176_v42, 0.0 }
 0x164   :  { %v181_v45 = vmax.f32 %v171_v44, 0.0 }
 0x166   :  { %366 = vmatprep.mubr.msk.f32.mxu1 %vm14_vm0, %v181_v45 }
 0x167   :  { %367 = vmatmul.mubr.msk.f32.gmra.mrb[2].mxu1 %vm14_vm0, %v182_v46 }
 0x236   :  { %v365_v47 = vpop.f32.mrb[0].mxu1 }
 0x237   :  { %308 = vst.msk [vmem:[%s475_s3 + $0x8] sm:$0xff] %vm306_vm2, %v365_v47  ;;  %v287_v48 = vpop.f32.mrb[1].mxu1 }
 0x238   :  { %307 = vst.msk [vmem:[%s475_s3] sm:$0xff] %vm306_vm2, %v287_v48 }
 0x23a   :  { %v368_v49 = vpop.f32.mrb[2].mxu1 }
 0x23b   :  { %310 = vst.msk [vmem:[%s475_s3 + $0x18] sm:$0xff] %vm306_vm2, %v368_v49  ;;  %v297_v50 = vpop.f32.mrb[3].mxu1 }
 0x23c   :  { %309 = vst.msk [vmem:[%s475_s3 + $0x10] sm:$0xff] %vm306_vm2, %v297_v50 }

</bundles_post_ra>
